<compile_context>
chip_gen: v6e
topology: v6e:2x2x1
jax: 0.10.0
libtpu: 0.0.40
codegen_flags: <defaults>
</compile_context>

<pallas_src>
import functools

import jax
import jax.numpy as jnp
from jax.experimental import pallas as pl
from jax.experimental.pallas import tpu as pltpu

SMOOTH = 1e-6
LANE = 128      # lane width
MAX_TM = 8192   # max rows per grid tile (4 MiB per f32 input tile)
CHUNK = 512     # rows per in-kernel fold chunk (bounds live VMEM temps)
N_SPLIT = 2     # leading 'parallel' grid axis (uses both TCs on v7x)


def _round_up(x, m):
    return (x + m - 1) // m * m


def _min_sublane(dtype):
    # Sublane packing multiple: f32 -> 8, bf16/f16 -> 16, int8/bool -> 32.
    return max(8, 32 // jnp.dtype(dtype).itemsize)


def _iou_sums_kernel(p_ref, t_ref, inter_ref, total_ref, *, tm, chunk, rows):
    s = pl.program_id(0)
    k = pl.program_id(1)
    steps = pl.num_programs(1)
    blk = s * steps + k               # logical row-tile index (unclamped)
    rows_left = rows - blk * tm       # valid rows in this tile (<=0 on overhang)
    n_chunks = tm // chunk

    # Zero this split's accumulators at the start of its reduction axis.
    @pl.when(k == 0)
    def _():
        inter_ref[...] = jnp.zeros_like(inter_ref)
        total_ref[...] = jnp.zeros_like(total_ref)

    def fold(masked):
        # Statically unrolled chunk loop: temps are bounded to (chunk, LANE)
        # f32 (256 KiB), accumulation lands directly in the (8, LANE) output
        # accumulators -> pure VPU adds, no cross-lane reduce in the hot loop.
        for c in range(n_chunks):
            off = c * chunk
            p = p_ref[pl.ds(off, chunk), :].astype(jnp.float32)
            t = t_ref[pl.ds(off, chunk), :].astype(jnp.float32)
            # sigmoid(x) == 0.5*tanh(0.5*x) + 0.5 : single EUP op (no divide).
            sp = 0.5 * jnp.tanh(0.5 * p) + 0.5
            prod = sp * t   # -> intersection
            tot = sp + t    # -> sum(pred) + sum(true), combined accumulator
            if masked:
                # Row-wise validity only: any garbage (incl. NaN) read from the
                # unspecified tail of the VMEM block is dropped by the select.
                row = jax.lax.broadcasted_iota(jnp.int32, (chunk, LANE), 0)
                valid = row < (rows_left - off)
                prod = jnp.where(valid, prod, 0.0)
                tot = jnp.where(valid, tot, 0.0)
            inter_ref[...] += prod.reshape(chunk // 8, 8, LANE).sum(axis=0)
            total_ref[...] += tot.reshape(chunk // 8, 8, LANE).sum(axis=0)

    # Only tiles that straddle (or lie beyond) the valid row count take the
    # masked path; steady-state tiles run the lean unmasked path.
    @pl.when(rows_left >= tm)
    def _():
        fold(False)

    @pl.when(rows_left < tm)
    def _():
        fold(True)


def iou_loss(pred_mask, true_mask):
    """Pallas equivalent of IoULoss.forward(pred_mask, true_mask) -> scalar."""
    p = pred_mask.reshape(-1)
    t = true_mask.reshape(-1)
    n = p.shape[0]
    rows = n // LANE
    n_main = rows * LANE

    inter = jnp.float32(0.0)
    total = jnp.float32(0.0)

    # Ragged tail (< 128 elements): fold in with plain jnp ops; no full-array
    # pad/copy of the inputs in HBM.
    if n_main < n:
        pt = p[n_main:].astype(jnp.float32)
        tt = t[n_main:].astype(jnp.float32)
        spt = jax.nn.sigmoid(pt)
        inter = inter + jnp.sum(spt * tt)
        total = total + jnp.sum(spt) + jnp.sum(tt)

    if rows > 0:
        p2 = (p if n_main == n else p[:n_main]).reshape(rows, LANE)
        t2 = (t if n_main == n else t[:n_main]).reshape(rows, LANE)

        sub = max(_min_sublane(p2.dtype), _min_sublane(t2.dtype))
        if rows <= CHUNK:
            tm = _round_up(rows, sub)
            chunk = tm
        else:
            tm = min(MAX_TM, _round_up(rows, CHUNK))
            chunk = CHUNK

        row_tiles = pl.cdiv(rows, tm)
        n_split = N_SPLIT if row_tiles >= N_SPLIT else 1
        steps = pl.cdiv(row_tiles, n_split)

        def in_map(s, k):
            # Clamp so the (at most n_split-1) overhang steps of the last split
            # re-read the final real tile; the kernel masks them to zero.
            return (jnp.minimum(s * steps + k, row_tiles - 1), 0)

        # Explicit VMEM budget: 2 inputs x 2 pipeline buffers x tile bytes,
        # plus headroom for chunk temps / outputs / internal scratch. For f32
        # inputs at tm=8192 this is ~24 MiB: above v5e's 16 MiB scoped default,
        # comfortably under v7x's 32 MiB default / 64 MiB physical VMEM.
        buf_bytes = 2 * tm * LANE * (p2.dtype.itemsize + t2.dtype.itemsize)
        vmem_limit = min(buf_bytes + (8 << 20), 100 << 20)

        n_elem = rows * LANE
        cost = pl.CostEstimate(
            flops=6 * n_elem,
            transcendentals=n_elem,
            bytes_accessed=(p2.size * p2.dtype.itemsize
                            + t2.size * t2.dtype.itemsize
                            + 2 * n_split * 8 * LANE * 4),
        )

        kernel = functools.partial(_iou_sums_kernel, tm=tm, chunk=chunk, rows=rows)

        out_inter, out_total = pl.pallas_call(
            kernel,
            out_shape=(
                jax.ShapeDtypeStruct((n_split * 8, LANE), jnp.float32),
                jax.ShapeDtypeStruct((n_split * 8, LANE), jnp.float32),
            ),
            grid_spec=pltpu.PrefetchScalarGridSpec(
                num_scalar_prefetch=0,
                grid=(n_split, steps),
                in_specs=[
                    pl.BlockSpec((tm, LANE), in_map),
                    pl.BlockSpec((tm, LANE), in_map),
                ],
                out_specs=[
                    pl.BlockSpec((8, LANE), lambda s, k: (s, 0)),
                    pl.BlockSpec((8, LANE), lambda s, k: (s, 0)),
                ],
            ),
            compiler_params=pltpu.CompilerParams(
                dimension_semantics=("parallel", "arbitrary"),
                vmem_limit_bytes=vmem_limit),
            cost_estimate=cost,
        )(p2, t2)

        # Tiny final cross-lane reduce + IoU math (negligible vs the HBM scan).
        inter = inter + jnp.sum(out_inter)
        total = total + jnp.sum(out_total)

    union = total - inter
    return 1.0 - (inter + SMOOTH) / (union + SMOOTH)


def _reference(pred_mask, true_mask):
    p = jax.nn.sigmoid(pred_mask.astype(jnp.float32)).reshape(-1)
    t = true_mask.astype(jnp.float32).reshape(-1)
    inter = jnp.sum(p * t)
    total = jnp.sum(p) + jnp.sum(t)
    union = total - inter
    return 1.0 - (inter + SMOOTH) / (union + SMOOTH)


if __name__ == "__main__":
    key = jax.random.PRNGKey(0)
    k1, k2 = jax.random.split(key)
    # NCHW logits and a binary ground-truth mask.
    pred = jax.random.normal(k1, (2, 4, 16, 16), dtype=jnp.float32)
    true = (jax.random.uniform(k2, (2, 4, 16, 16)) > 0.5).astype(jnp.float32)

    loss = jax.block_until_ready(iou_loss(pred, true))
    ref = jax.block_until_ready(_reference(pred, true))

    assert jnp.allclose(loss, ref, atol=1e-5, rtol=1e-5), (loss, ref)
    print("KERNEL_OK")
</pallas_src>

<mosaic_0001>
module attributes {stable_mosaic.version = 11 : i64} {
  func.func @_iou_sums_kernel(%arg0: i32, %arg1: i32, %arg2: memref<16x128xf32, #tpu.memory_space<vmem>>, %arg3: memref<16x128xf32, #tpu.memory_space<vmem>>, %arg4: memref<8x128xf32, #tpu.memory_space<vmem>>, %arg5: memref<8x128xf32, #tpu.memory_space<vmem>>) attributes {dimension_semantics = [#tpu.dimension_semantics<parallel>, #tpu.dimension_semantics<arbitrary>], iteration_bounds = array<i64: 1, 1>, scalar_prefetch = 0 : i64, scratch_operands = 0 : i64, tpu.core_type = #tpu.core_type<tc>, window_params = [{transform_indices = @transform_0, window_bounds = array<i64: 16, 128>}, {transform_indices = @transform_1, window_bounds = array<i64: 16, 128>}, {transform_indices = @transform_2, window_bounds = array<i64: 8, 128>}, {transform_indices = @transform_3, window_bounds = array<i64: 8, 128>}]} {
    %c1_i32 = arith.constant 1 : i32
    %0 = arith.muli %arg0, %c1_i32 : i32
    %1 = arith.addi %0, %arg1 : i32
    %c16_i32 = arith.constant 16 : i32
    %2 = arith.muli %1, %c16_i32 : i32
    %c16_i32_0 = arith.constant 16 : i32
    %3 = arith.subi %c16_i32_0, %2 : i32
    %c0_i32 = arith.constant 0 : i32
    %4 = arith.cmpi eq, %arg1, %c0_i32 : i32
    %5 = arith.extui %4 : i1 to i32
    %c0_i32_1 = arith.constant 0 : i32
    %6 = arith.cmpi ne, %5, %c0_i32_1 : i32
    scf.if %6 {
      %cst = arith.constant 0.000000e+00 : f32
      %13 = vector.broadcast %cst : f32 to vector<8x128xf32>
      %c0 = arith.constant 0 : index
      %c0_6 = arith.constant 0 : index
      %14 = vector.load %arg4[%c0, %c0_6] : memref<8x128xf32, #tpu.memory_space<vmem>>, vector<8x128xf32>
      tpu.vector_store %arg4[%c0, %c0_6], %13 {strides = array<i32>} : memref<8x128xf32, #tpu.memory_space<vmem>>, vector<8x128xf32>,
      %cst_7 = arith.constant 0.000000e+00 : f32
      %15 = vector.broadcast %cst_7 : f32 to vector<8x128xf32>
      %c0_8 = arith.constant 0 : index
      %c0_9 = arith.constant 0 : index
      %16 = vector.load %arg5[%c0_8, %c0_9] : memref<8x128xf32, #tpu.memory_space<vmem>>, vector<8x128xf32>
      tpu.vector_store %arg5[%c0_8, %c0_9], %15 {strides = array<i32>} : memref<8x128xf32, #tpu.memory_space<vmem>>, vector<8x128xf32>,
    } else {
    }
    %c16_i32_2 = arith.constant 16 : i32
    %7 = arith.cmpi sge, %3, %c16_i32_2 : i32
    %8 = arith.extui %7 : i1 to i32
    %c0_i32_3 = arith.constant 0 : i32
    %9 = arith.cmpi ne, %8, %c0_i32_3 : i32
    scf.if %9 {
      %c0 = arith.constant 0 : index
      %c0_6 = arith.constant 0 : index
      %13 = vector.load %arg2[%c0, %c0_6] : memref<16x128xf32, #tpu.memory_space<vmem>>, vector<16x128xf32>
      %c0_7 = arith.constant 0 : index
      %c0_8 = arith.constant 0 : index
      %14 = vector.load %arg3[%c0_7, %c0_8] : memref<16x128xf32, #tpu.memory_space<vmem>>, vector<16x128xf32>
      %cst = arith.constant 5.000000e-01 : f32
      %15 = vector.broadcast %cst : f32 to vector<16x128xf32>
      %16 = arith.mulf %15, %13 : vector<16x128xf32>
      %17 = math.tanh %16 : vector<16x128xf32>
      %cst_9 = arith.constant 5.000000e-01 : f32
      %18 = vector.broadcast %cst_9 : f32 to vector<16x128xf32>
      %19 = arith.mulf %18, %17 : vector<16x128xf32>
      %cst_10 = arith.constant 5.000000e-01 : f32
      %20 = vector.broadcast %cst_10 : f32 to vector<16x128xf32>
      %21 = arith.addf %19, %20 : vector<16x128xf32>
      %22 = arith.mulf %21, %14 : vector<16x128xf32>
      %23 = arith.addf %21, %14 : vector<16x128xf32>
      %c0_11 = arith.constant 0 : index
      %c0_12 = arith.constant 0 : index
      %24 = vector.load %arg4[%c0_11, %c0_12] : memref<8x128xf32, #tpu.memory_space<vmem>>, vector<8x128xf32>
      %25 = vector.shape_cast %22 : vector<16x128xf32> to vector<2x8x128xf32>
      %cst_13 = arith.constant dense<0.000000e+00> : vector<8x128xf32>
      %26 = vector.multi_reduction <add>, %25, %cst_13 [0] : vector<2x8x128xf32> to vector<8x128xf32>
      %27 = arith.addf %24, %26 : vector<8x128xf32>
      %c0_14 = arith.constant 0 : index
      %c0_15 = arith.constant 0 : index
      %28 = vector.load %arg4[%c0_14, %c0_15] : memref<8x128xf32, #tpu.memory_space<vmem>>, vector<8x128xf32>
      tpu.vector_store %arg4[%c0_14, %c0_15], %27 {strides = array<i32>} : memref<8x128xf32, #tpu.memory_space<vmem>>, vector<8x128xf32>,
      %c0_16 = arith.constant 0 : index
      %c0_17 = arith.constant 0 : index
      %29 = vector.load %arg5[%c0_16, %c0_17] : memref<8x128xf32, #tpu.memory_space<vmem>>, vector<8x128xf32>
      %30 = vector.shape_cast %23 : vector<16x128xf32> to vector<2x8x128xf32>
      %cst_18 = arith.constant dense<0.000000e+00> : vector<8x128xf32>
      %31 = vector.multi_reduction <add>, %30, %cst_18 [0] : vector<2x8x128xf32> to vector<8x128xf32>
      %32 = arith.addf %29, %31 : vector<8x128xf32>
      %c0_19 = arith.constant 0 : index
      %c0_20 = arith.constant 0 : index
      %33 = vector.load %arg5[%c0_19, %c0_20] : memref<8x128xf32, #tpu.memory_space<vmem>>, vector<8x128xf32>
      tpu.vector_store %arg5[%c0_19, %c0_20], %32 {strides = array<i32>} : memref<8x128xf32, #tpu.memory_space<vmem>>, vector<8x128xf32>,
    } else {
    }
    %c16_i32_4 = arith.constant 16 : i32
    %10 = arith.cmpi slt, %3, %c16_i32_4 : i32
    %11 = arith.extui %10 : i1 to i32
    %c0_i32_5 = arith.constant 0 : i32
    %12 = arith.cmpi ne, %11, %c0_i32_5 : i32
    scf.if %12 {
      %c0 = arith.constant 0 : index
      %c0_6 = arith.constant 0 : index
      %13 = vector.load %arg2[%c0, %c0_6] : memref<16x128xf32, #tpu.memory_space<vmem>>, vector<16x128xf32>
      %c0_7 = arith.constant 0 : index
      %c0_8 = arith.constant 0 : index
      %14 = vector.load %arg3[%c0_7, %c0_8] : memref<16x128xf32, #tpu.memory_space<vmem>>, vector<16x128xf32>
      %cst = arith.constant 5.000000e-01 : f32
      %15 = vector.broadcast %cst : f32 to vector<16x128xf32>
      %16 = arith.mulf %15, %13 : vector<16x128xf32>
      %17 = math.tanh %16 : vector<16x128xf32>
      %cst_9 = arith.constant 5.000000e-01 : f32
      %18 = vector.broadcast %cst_9 : f32 to vector<16x128xf32>
      %19 = arith.mulf %18, %17 : vector<16x128xf32>
      %cst_10 = arith.constant 5.000000e-01 : f32
      %20 = vector.broadcast %cst_10 : f32 to vector<16x128xf32>
      %21 = arith.addf %19, %20 : vector<16x128xf32>
      %22 = arith.mulf %21, %14 : vector<16x128xf32>
      %23 = arith.addf %21, %14 : vector<16x128xf32>
      %24 = tpu.iota {dimensions = array<i32: 0>} : vector<16x128xi32>
      %c0_i32_11 = arith.constant 0 : i32
      %25 = arith.subi %3, %c0_i32_11 : i32
      %26 = vector.broadcast %25 : i32 to vector<16x128xi32>
      %27 = arith.cmpi slt, %24, %26 : vector<16x128xi32>
      %cst_12 = arith.constant 0.000000e+00 : f32
      %28 = vector.broadcast %cst_12 : f32 to vector<16x128xf32>
      %29 = arith.select %27, %22, %28 : vector<16x128xi1>, vector<16x128xf32>
      %cst_13 = arith.constant 0.000000e+00 : f32
      %30 = vector.broadcast %cst_13 : f32 to vector<16x128xf32>
      %31 = arith.select %27, %23, %30 : vector<16x128xi1>, vector<16x128xf32>
      %c0_14 = arith.constant 0 : index
      %c0_15 = arith.constant 0 : index
      %32 = vector.load %arg4[%c0_14, %c0_15] : memref<8x128xf32, #tpu.memory_space<vmem>>, vector<8x128xf32>
      %33 = vector.shape_cast %29 : vector<16x128xf32> to vector<2x8x128xf32>
      %cst_16 = arith.constant dense<0.000000e+00> : vector<8x128xf32>
      %34 = vector.multi_reduction <add>, %33, %cst_16 [0] : vector<2x8x128xf32> to vector<8x128xf32>
      %35 = arith.addf %32, %34 : vector<8x128xf32>
      %c0_17 = arith.constant 0 : index
      %c0_18 = arith.constant 0 : index
      %36 = vector.load %arg4[%c0_17, %c0_18] : memref<8x128xf32, #tpu.memory_space<vmem>>, vector<8x128xf32>
      tpu.vector_store %arg4[%c0_17, %c0_18], %35 {strides = array<i32>} : memref<8x128xf32, #tpu.memory_space<vmem>>, vector<8x128xf32>,
      %c0_19 = arith.constant 0 : index
      %c0_20 = arith.constant 0 : index
      %37 = vector.load %arg5[%c0_19, %c0_20] : memref<8x128xf32, #tpu.memory_space<vmem>>, vector<8x128xf32>
      %38 = vector.shape_cast %31 : vector<16x128xf32> to vector<2x8x128xf32>
      %cst_21 = arith.constant dense<0.000000e+00> : vector<8x128xf32>
      %39 = vector.multi_reduction <add>, %38, %cst_21 [0] : vector<2x8x128xf32> to vector<8x128xf32>
      %40 = arith.addf %37, %39 : vector<8x128xf32>
      %c0_22 = arith.constant 0 : index
      %c0_23 = arith.constant 0 : index
      %41 = vector.load %arg5[%c0_22, %c0_23] : memref<8x128xf32, #tpu.memory_space<vmem>>, vector<8x128xf32>
      tpu.vector_store %arg5[%c0_22, %c0_23], %40 {strides = array<i32>} : memref<8x128xf32, #tpu.memory_space<vmem>>, vector<8x128xf32>,
    } else {
    }
    return
  }
  func.func @transform_0(%arg0: i32, %arg1: i32) -> (i32, i32) {
    %c1_i32 = arith.constant 1 : i32
    %0 = arith.muli %arg0, %c1_i32 : i32
    %1 = arith.addi %0, %arg1 : i32
    %c0_i32 = arith.constant 0 : i32
    %2 = arith.minsi %1, %c0_i32 : i32
    %c0_i32_0 = arith.constant 0 : i32
    %c0_i32_1 = arith.constant 0 : i32
    return %2, %c0_i32_0 : i32, i32
  }
  func.func @transform_1(%arg0: i32, %arg1: i32) -> (i32, i32) {
    %c1_i32 = arith.constant 1 : i32
    %0 = arith.muli %arg0, %c1_i32 : i32
    %1 = arith.addi %0, %arg1 : i32
    %c0_i32 = arith.constant 0 : i32
    %2 = arith.minsi %1, %c0_i32 : i32
    %c0_i32_0 = arith.constant 0 : i32
    %c0_i32_1 = arith.constant 0 : i32
    return %2, %c0_i32_0 : i32, i32
  }
  func.func @transform_2(%arg0: i32, %arg1: i32) -> (i32, i32) {
    %c0_i32 = arith.constant 0 : i32
    %c0_i32_0 = arith.constant 0 : i32
    return %arg0, %c0_i32 : i32, i32
  }
  func.func @transform_3(%arg0: i32, %arg1: i32) -> (i32, i32) {
    %c0_i32 = arith.constant 0 : i32
    %c0_i32_0 = arith.constant 0 : i32
    return %arg0, %c0_i32 : i32, i32
  }
}

</mosaic_0001>

<bundles_post_ra>
// kernel: tpu_custom_call.1
= control target key start
LH: loop header
LB: loop body
LE: loop exit
PB: predicated region body
PF: predicated region fallthrough
CT: control target
= control target key end

     0   :  { %9 = vsyncpa [#allocation3], 0  ;;  %s309_s0 = inlined_call_operand.hbm [shape: f32[16,128], index: 0, kind: input, shape index: {}]   ;;  %s310_s1 = inlined_call_operand.hbm [shape: f32[16,128], index: 1, kind: input, shape index: {}]   ;;  %s311_s2 = inlined_call_operand.hbm [shape: f32[8,128], index: 2, kind: output, shape index: {0}]   ;;  %s312_s3 = inlined_call_operand.hbm [shape: f32[8,128], index: 3, kind: output, shape index: {1}]  }
   0x1   :  { %10 = vsyncpa [#allocation6], 0 }
   0x2   :  { %11 = vsyncpa [#allocation4], 0 }
   0x3   :  { %12 = vsyncpa [#allocation9], 0  ;;  %s271_s12 = smov [#allocation2]  }
   0x4   :  { %s24_s13 = sshll.u32 %s271_s12, 4  ;;  %s25_s13 = int_to_ptr.vmem [resolvable:$true] %s24_s13 }
   0x5   :  { %s191_s14 = scalar_lea.vmem %s25_s13, 256  ;;  %p196_p1 = scmp.lt.s32.totalorder %s25_s13, %s25_s13 }
   0x6   :  { %p192_p0 = scmp.ne.s32.totalorder %s25_s13, %s191_s14  ;;  %p197_p2 = scmp.lt.s32.totalorder %s191_s14, %s191_s14 }
   0x8   :  { %p198_p3 = por %p197_p2, %p196_p1 }
   0xa   :  { %p199_p4 = pnand %p198_p3, %p192_p0 }
   0xc   :  { %202 = shalt.err (!%p199_p4)
}
   0xd   :  { %s272_s15 = smov 128   ;;  %s273_s16 = smov 8  }
   0xe   :  { %30 = dma.hbm_to_vmem [thread:$0]  %s309_s0, 256, %s25_s13, [#allocation3], %s272_s15, %s272_s15, %s273_s16  }
   0xf   :  { %s274_s19 = smov [#allocation5]  }
  0x10   :  { %s42_s20 = sshll.u32 %s274_s19, 4  ;;  %s43_s20 = int_to_ptr.vmem [resolvable:$true] %s42_s20 }
  0x11   :  { %s211_s21 = scalar_lea.vmem %s43_s20, 256  ;;  %p216_p6 = scmp.lt.s32.totalorder %s43_s20, %s43_s20 }
  0x12   :  { %p212_p5 = scmp.ne.s32.totalorder %s43_s20, %s211_s21  ;;  %p217_p7 = scmp.lt.s32.totalorder %s211_s21, %s211_s21 }
  0x14   :  { %p218_p8 = por %p217_p7, %p216_p6 }
  0x16   :  { %p219_p9 = pnand %p218_p8, %p212_p5 }
  0x18   :  { %222 = shalt.err (!%p219_p9)
}
  0x19   :  { %48 = dma.hbm_to_vmem [thread:$0]  %s310_s1, 256, %s43_s20, [#allocation6], %s272_s15, %s272_s15, %s273_s16  }
  0x1a   :  { %263 = dma.done.wait [#allocation3], 256  }
  0x1b   :  { %264 = vsyncadd [#allocation3], 4294967040 }
  0x1c   :  { %265 = dma.done.wait [#allocation6], 256  }
  0x1d   :  { %266 = vsyncadd [#allocation6], 4294967040  ;;  %v76_v0 = vld [vmem:[#allocation2] sm:$0xff]  ;;  %v77_v1 = vld [vmem:[#allocation2 + $0x8] sm:$0xff]  ;;  %s275_s0 = smov [#allocation7]   ;;  %s276_s24 = smov [#allocation8]  }
  0x1e   :  { %v80_v2 = vmul.f32 0.5, %v76_v0  ;;  %v81_v3 = vmul.f32 0.5, %v77_v1  ;;  %v78_v7 = vld [vmem:[#allocation5] sm:$0xff]  ;;  %v79_v9 = vld [vmem:[#allocation5 + $0x8] sm:$0xff]  ;;  %s144_s1 = sshll.u32 %s275_s0, 4  ;;  %s154_s25 = sshll.u32 %s276_s24, 4  ;;  %s145_s1 = int_to_ptr.vmem [resolvable:$true] %s144_s1  ;;  %s155_s25 = int_to_ptr.vmem [resolvable:$true] %s154_s25 }
  0x1f   :  { %s223_s26 = scalar_lea.vmem %s145_s1, 128  ;;  %p228_p11 = scmp.lt.s32.totalorder %s145_s1, %s145_s1 }
  0x20   :  { %179 = vtanh.f32 %v80_v2  ;;  %p224_p10 = scmp.ne.s32.totalorder %s145_s1, %s223_s26  ;;  %p229_p12 = scmp.lt.s32.totalorder %s223_s26, %s223_s26 }
  0x21   :  { %181 = vtanh.f32 %v81_v3 }
  0x22   :  { %p230_p13 = por %p229_p12, %p228_p11 }
  0x24   :  { %p231_p0 = pnand %p230_p13, %p224_p10 }
  0x2d   :  { %v180_v4 = vpop.eup %179 }
  0x2e   :  { %v182_v5 = vpop.eup %181  ;;  %v84_v6 = vmul.f32 0.5, %v180_v4 }
  0x2f   :  { %v85_v8 = vmul.f32 0.5, %v182_v5 }
  0x30   :  { %v86_v10 = vadd.f32 0.5, %v84_v6 }
  0x31   :  { %v87_v11 = vadd.f32 0.5, %v85_v8 }
  0x32   :  { %v88_v12 = vmul.f32 %v86_v10, %v78_v7  ;;  %v90_v13 = vadd.f32 %v86_v10, %v78_v7 }
  0x33   :  { %v89_v14 = vmul.f32 %v87_v11, %v79_v9  ;;  %v91_v15 = vadd.f32 %v87_v11, %v79_v9 }
  0x35   :  { %v93_v16 = vadd.f32 %v89_v14, %v88_v12  ;;  %v97_v17 = vadd.f32 %v91_v15, %v90_v13 }
  0x37   :  { %95 = vst [vmem:[#allocation7] sm:$0xff] %v93_v16  ;;  %99 = vst [vmem:[#allocation8] sm:$0xff] %v97_v17 }
  0x38   :  { %234 = shalt.err (!%p231_p0)
}
  0x39   :  { %147 = dma.vmem_to_hbm [thread:$0]  %s145_s1, 128, %s311_s2, [#allocation4]  }
  0x3a   :  { %s243_s29 = scalar_lea.vmem %s155_s25, 128  ;;  %p248_p2 = scmp.lt.s32.totalorder %s155_s25, %s155_s25 }
  0x3b   :  { %p244_p1 = scmp.ne.s32.totalorder %s155_s25, %s243_s29  ;;  %p249_p3 = scmp.lt.s32.totalorder %s243_s29, %s243_s29 }
  0x3d   :  { %p250_p4 = por %p249_p3, %p248_p2 }
  0x3f   :  { %p251_p5 = pnand %p250_p4, %p244_p1 }
  0x41   :  { %254 = shalt.err (!%p251_p5)
}
  0x42   :  { %157 = dma.vmem_to_hbm [thread:$0]  %s155_s25, 128, %s312_s3, [#allocation9]  }
  0x43   :  { %267 = dma.done.wait [#allocation4], 128  }
  0x44   :  { %268 = vsyncadd [#allocation4], 4294967168 }
  0x45   :  { %269 = dma.done.wait [#allocation9], 128  }
  0x46   :  { %270 = vsyncadd [#allocation9], 4294967168 }
  0x47   :  { %164 = vsyncpa [#allocation3], 1 }
  0x48   :  { %165 = vsyncpa [#allocation6], 1 }
  0x49   :  { %166 = vsyncpa [#allocation4], 1 }
  0x4a   :  { %167 = vsyncpa [#allocation9], 1 }

</bundles_post_ra>
